<compile_context>
chip_gen: v7x
topology: tpu7x:2x2x1
jax: 0.10.0
libtpu: 0.0.40
codegen_flags: <defaults>
</compile_context>

<pallas_src>
import functools
import math

import jax
import jax.numpy as jnp
from jax.experimental import pallas as pl
from jax.experimental.pallas import tpu as pltpu


_INV_SQRT2 = 1.0 / math.sqrt(2.0)


def _gelu_exact(x):
    # PyTorch nn.GELU() default: exact erf-based GELU.
    return 0.5 * x * (1.0 + jax.lax.erf(x * _INV_SQRT2))


def _gelu_tanh(x):
    # tanh approximation -> EUP slot (nearly free when MXU/VALU-bound).
    return jax.nn.gelu(x, approximate=True)


def _apply_act(x, activation, approx_gelu):
    if activation == "relu":
        return jnp.maximum(x, 0.0)
    return _gelu_tanh(x) if approx_gelu else _gelu_exact(x)


def _round_up(x, m):
    return ((x + m - 1) // m) * m


def _vmem_cap_bytes():
    # ~62.5% of physical VMEM: ~40 MiB on v7x (64 MiB), ~80 MiB on v5e/v6e (128 MiB).
    try:
        cap = int(pltpu.get_tpu_info().vmem_capacity_bytes)
    except Exception:
        cap = 64 << 20  # conservative (v7x per-TC) if the query is unavailable
    return (cap * 5) // 8


# ---------------------------------------------------------------------------
# Kernels
# ---------------------------------------------------------------------------
def _single_k_kernel(x_ref, w_ref, b_ref, o_ref, *, activation, approx_gelu):
    # x_ref: (tm, K), w_ref: (K, tn), b_ref: (1, tn) f32, o_ref: (tm, tn)
    acc = jnp.dot(x_ref[...], w_ref[...], preferred_element_type=jnp.float32)
    acc = acc + b_ref[...]  # bias folded directly, broadcasts over rows
    o_ref[...] = _apply_act(acc, activation, approx_gelu).astype(o_ref.dtype)


def _multi_k_kernel(x_ref, w_ref, b_ref, o_ref, acc_ref, *, activation, approx_gelu):
    # x_ref: (tm, tk), w_ref: (tk, tn), b_ref: (1, tn) f32, acc_ref: (tm, tn) f32
    k = pl.program_id(2)

    @pl.when(k == 0)
    def _init():
        # Fold the bias into the accumulator init (no separate add pass later).
        acc_ref[...] = jnp.broadcast_to(b_ref[...], acc_ref.shape)

    acc_ref[...] += jnp.dot(x_ref[...], w_ref[...], preferred_element_type=jnp.float32)

    @pl.when(k == pl.num_programs(2) - 1)
    def _finalize():
        o_ref[...] = _apply_act(acc_ref[...], activation, approx_gelu).astype(o_ref.dtype)


# ---------------------------------------------------------------------------
# Wrapper
# ---------------------------------------------------------------------------
def comodal_intermediate(hidden_state, weight, bias, *, tm=None, tn=None, tk=None,
                         compute_dtype=None, out_dtype=None, activation="gelu",
                         approx_gelu=False, weight_buffers=None):
    """hidden_state: [B, S, H], weight: [H, OUT], bias: [OUT] -> [B, S, OUT].

    compute_dtype=jnp.bfloat16 casts x/weight for the MXU (v6e/v7x throughput),
    out_dtype=jnp.bfloat16 halves writeback traffic, approx_gelu=True uses the
    tanh GELU (EUP).  All default off for exact PyTorch semantics.
    """
    B, S, H = hidden_state.shape
    Hw, OUT = weight.shape
    assert Hw == H, "weight must be [H, OUT] (transposed nn.Linear weight)"
    M = B * S

    out_dt = hidden_state.dtype if out_dtype is None else jnp.dtype(out_dtype)
    in_dt = hidden_state.dtype if compute_dtype is None else jnp.dtype(compute_dtype)
    sub32 = jnp.dtype(in_dt).itemsize < 4 or jnp.dtype(out_dt).itemsize < 4
    m_align = 16 if sub32 else 8  # bf16 packs 16 rows per sublane

    # ---- tile selection ---------------------------------------------------
    tm_auto = tm is None
    if tm is None:
        tm = min(512, _round_up(M, m_align))
    if tn is None:
        tn = min(512, _round_up(OUT, 128))   # lane-dense, MXU-wide output tile
    if tk is None:
        if H <= 2048:
            tk = H                            # single K step -> fast path
        else:
            tk = next((c for c in (2048, 1024, 512, 256) if H % c == 0), 512)

    Hp = _round_up(H, tk)
    grid_m = pl.cdiv(M, tm)
    grid_n = pl.cdiv(OUT, tn)
    grid_k = Hp // tk
    flops = 2 * M * H * OUT

    # Megacore: make sure >=2 parallel steps exist when there is real work.
    if tm_auto and grid_m * grid_n < 2 and flops >= (1 << 23):
        half = _round_up(max(m_align, tm // 2), m_align)
        if pl.cdiv(M, half) >= 2:
            tm = half
            grid_m = pl.cdiv(M, tm)

    # (8/16, 128) block constraints.
    assert tm % m_align == 0, f"tm={tm} must be a multiple of {m_align}"
    assert tn % 128 == 0, f"tn={tn} must be a multiple of 128"
    assert tk % 128 == 0 or tk == Hp, f"tk={tk} must be a multiple of 128 or the full K dim"

    # ---- operand prep (K padding only; M/OUT ragged edges are masked) ------
    x2d = hidden_state.reshape(M, H)
    w2d = weight
    if Hp != H:
        x2d = jnp.pad(x2d, ((0, 0), (0, Hp - H)))
        w2d = jnp.pad(w2d, ((0, Hp - H), (0, 0)))
    if compute_dtype is not None:
        x2d = x2d.astype(compute_dtype)
        w2d = w2d.astype(compute_dtype)
    b2d = bias.reshape(1, OUT).astype(jnp.float32)

    # ---- VMEM budget --------------------------------------------------------
    xb = jnp.dtype(x2d.dtype).itemsize
    wb = jnp.dtype(w2d.dtype).itemsize
    ob = jnp.dtype(out_dt).itemsize
    need = 2 * (tm * tk * xb + tk * tn * wb + tn * 4) + 2 * tm * tn * ob
    if grid_k > 1:
        need += tm * tn * 4
        if weight_buffers is not None and weight_buffers > 2:
            need += (weight_buffers - 2) * tk * tn * wb
    cap = _vmem_cap_bytes()
    vmem_limit = int(max(min(cap, max(int(1.5 * need), 16 << 20)), int(1.25 * need)))

    cost = pl.CostEstimate(
        flops=flops,
        transcendentals=M * OUT,
        bytes_accessed=M * H * xb + H * OUT * wb + OUT * 4 + M * OUT * ob,
    )

    # ---- specs & call -------------------------------------------------------
    if grid_k == 1:
        kernel = functools.partial(_single_k_kernel, activation=activation,
                                   approx_gelu=approx_gelu)
        grid = (grid_m, grid_n)
        in_specs = [
            pl.BlockSpec((tm, tk), lambda i, j: (i, 0)),   # activation tile
            pl.BlockSpec((tk, tn), lambda i, j: (0, j)),   # weight tile
            pl.BlockSpec((1, tn), lambda i, j: (0, j)),    # bias tile
        ]
        out_specs = pl.BlockSpec((tm, tn), lambda i, j: (i, j))
        scratch = []
        dims = ("parallel", "parallel")
    else:
        kernel = functools.partial(_multi_k_kernel, activation=activation,
                                   approx_gelu=approx_gelu)
        grid = (grid_m, grid_n, grid_k)
        w_kwargs = {}
        if weight_buffers is not None and weight_buffers > 2:
            w_kwargs["pipeline_mode"] = pl.Buffered(weight_buffers)
        in_specs = [
            pl.BlockSpec((tm, tk), lambda i, j, k: (i, k)),
            pl.BlockSpec((tk, tn), lambda i, j, k: (k, j), **w_kwargs),
            pl.BlockSpec((1, tn), lambda i, j, k: (0, j)),
        ]
        out_specs = pl.BlockSpec((tm, tn), lambda i, j, k: (i, j))
        scratch = [pltpu.VMEM((tm, tn), jnp.float32)]
        dims = ("parallel", "parallel", "arbitrary")

    out2d = pl.pallas_call(
        kernel,
        out_shape=jax.ShapeDtypeStruct((M, OUT), out_dt),
        grid_spec=pltpu.PrefetchScalarGridSpec(
            num_scalar_prefetch=0,
            grid=grid,
            in_specs=in_specs,
            out_specs=out_specs,
            scratch_shapes=scratch,
        ),
        compiler_params=pltpu.CompilerParams(
            dimension_semantics=dims,
            vmem_limit_bytes=vmem_limit,
        ),
        cost_estimate=cost,
    )(x2d, w2d, b2d)

    return out2d.reshape(B, S, OUT)


if __name__ == "__main__":
    HI = jax.lax.Precision.HIGHEST

    # config_cross: hidden_size=32, factor_hidden_state=4, hidden_act='gelu'
    # Shipped config: single-K fast path, single grid step, no padding, no slice.
    B, S, H, FACTOR = 2, 8, 32, 4
    OUT = H * FACTOR

    key = jax.random.PRNGKey(0)
    k_x, k_w, k_b = jax.random.split(key, 3)
    hidden_state = jax.random.normal(k_x, (B, S, H), dtype=jnp.float32)
    bound = 1.0 / math.sqrt(H)
    weight = jax.random.uniform(k_w, (H, OUT), minval=-bound, maxval=bound,
                                dtype=jnp.float32)
    bias = jax.random.uniform(k_b, (OUT,), minval=-bound, maxval=bound,
                              dtype=jnp.float32)

    out = comodal_intermediate(hidden_state, weight, bias)
    jax.block_until_ready(out)
    ref = _gelu_exact(
        jnp.dot(hidden_state.reshape(-1, H), weight, precision=HI) + bias
    ).reshape(B, S, OUT)
    assert out.shape == (B, S, OUT)
    assert jnp.allclose(out, ref, atol=1e-5, rtol=1e-5)

    # Multi-K accumulator path: tk=128 forces 2 K steps, tn=128 forces N tiling,
    # M=26 exercises the ragged-M masked stores (no wrapper padding).
    B2, S2, H2, F2 = 2, 13, 256, 2
    OUT2 = H2 * F2
    k_x2, k_w2, k_b2 = jax.random.split(jax.random.PRNGKey(1), 3)
    x2 = jax.random.normal(k_x2, (B2, S2, H2), dtype=jnp.float32)
    bound2 = 1.0 / math.sqrt(H2)
    w2 = jax.random.uniform(k_w2, (H2, OUT2), minval=-bound2, maxval=bound2,
                            dtype=jnp.float32)
    b2 = jax.random.uniform(k_b2, (OUT2,), minval=-bound2, maxval=bound2,
                            dtype=jnp.float32)
    ref2 = _gelu_exact(
        jnp.dot(x2.reshape(-1, H2), w2, precision=HI) + b2
    ).reshape(B2, S2, OUT2)

    out2 = comodal_intermediate(x2, w2, b2, tm=8, tn=128, tk=128)
    jax.block_until_ready(out2)
    assert out2.shape == (B2, S2, OUT2)
    assert jnp.allclose(out2, ref2, atol=1e-4, rtol=1e-4)

    # Throughput-oriented variant: bf16 MXU operands + tanh-GELU (EUP), fast path.
    out3 = comodal_intermediate(x2, w2, b2, compute_dtype=jnp.bfloat16,
                                approx_gelu=True)
    jax.block_until_ready(out3)
    assert out3.shape == (B2, S2, OUT2)
    assert jnp.allclose(out3, ref2, atol=5e-2, rtol=5e-2)

    print("KERNEL_OK")
</pallas_src>

<mosaic_0001>
module attributes {stable_mosaic.version = 11 : i64} {
  func.func @_single_k_kernel(%arg0: i32, %arg1: i32, %arg2: memref<16x32xf32, #tpu.memory_space<vmem>>, %arg3: memref<32x128xf32, #tpu.memory_space<vmem>>, %arg4: memref<1x128xf32, #tpu.memory_space<vmem>>, %arg5: memref<16x128xf32, #tpu.memory_space<vmem>>) attributes {dimension_semantics = [#tpu.dimension_semantics<parallel>, #tpu.dimension_semantics<parallel>], iteration_bounds = array<i64: 1, 1>, scalar_prefetch = 0 : i64, scratch_operands = 0 : i64, tpu.core_type = #tpu.core_type<tc>, window_params = [{transform_indices = @transform_0, window_bounds = array<i64: 16, 32>}, {transform_indices = @transform_1, window_bounds = array<i64: 32, 128>}, {transform_indices = @transform_2, window_bounds = array<i64: 1, 128>}, {transform_indices = @transform_3, window_bounds = array<i64: 16, 128>}]} {
    %c0 = arith.constant 0 : index
    %c0_0 = arith.constant 0 : index
    %0 = vector.load %arg2[%c0, %c0_0] : memref<16x32xf32, #tpu.memory_space<vmem>>, vector<16x32xf32>
    %c0_1 = arith.constant 0 : index
    %c0_2 = arith.constant 0 : index
    %1 = vector.load %arg3[%c0_1, %c0_2] : memref<32x128xf32, #tpu.memory_space<vmem>>, vector<32x128xf32>
    %cst = arith.constant dense<0.000000e+00> : vector<16x128xf32>
    %2 = tpu.matmul %0, %1, %cst {dimension_numbers = #tpu.dot_dimension_numbers<[1], [0], [0], [1], [0, 0, 1, 1], [], []>} : vector<16x32xf32>, vector<32x128xf32>, vector<16x128xf32> -> vector<16x128xf32>
    %c0_3 = arith.constant 0 : index
    %c0_4 = arith.constant 0 : index
    %3 = vector.load %arg4[%c0_3, %c0_4] : memref<1x128xf32, #tpu.memory_space<vmem>>, vector<1x128xf32>
    %4 = vector.broadcast %3 : vector<1x128xf32> to vector<16x128xf32>
    %5 = arith.addf %2, %4 : vector<16x128xf32>
    %cst_5 = arith.constant 5.000000e-01 : f32
    %6 = vector.broadcast %cst_5 : f32 to vector<16x128xf32>
    %7 = arith.mulf %6, %5 : vector<16x128xf32>
    %cst_6 = arith.constant 0.707106769 : f32
    %8 = vector.broadcast %cst_6 : f32 to vector<16x128xf32>
    %9 = arith.mulf %5, %8 : vector<16x128xf32>
    %10 = math.erf %9 : vector<16x128xf32>
    %cst_7 = arith.constant 1.000000e+00 : f32
    %11 = vector.broadcast %cst_7 : f32 to vector<16x128xf32>
    %12 = arith.addf %11, %10 : vector<16x128xf32>
    %13 = arith.mulf %7, %12 : vector<16x128xf32>
    %c0_8 = arith.constant 0 : index
    %c0_9 = arith.constant 0 : index
    %14 = vector.load %arg5[%c0_8, %c0_9] : memref<16x128xf32, #tpu.memory_space<vmem>>, vector<16x128xf32>
    tpu.vector_store %arg5[%c0_8, %c0_9], %13 {strides = array<i32>} : memref<16x128xf32, #tpu.memory_space<vmem>>, vector<16x128xf32>,
    return
  }
  func.func @transform_0(%arg0: i32, %arg1: i32) -> (i32, i32) {
    %c0_i32 = arith.constant 0 : i32
    %c0_i32_0 = arith.constant 0 : i32
    return %arg0, %c0_i32 : i32, i32
  }
  func.func @transform_1(%arg0: i32, %arg1: i32) -> (i32, i32) {
    %c0_i32 = arith.constant 0 : i32
    %c0_i32_0 = arith.constant 0 : i32
    return %c0_i32, %arg1 : i32, i32
  }
  func.func @transform_2(%arg0: i32, %arg1: i32) -> (i32, i32) {
    %c0_i32 = arith.constant 0 : i32
    %c0_i32_0 = arith.constant 0 : i32
    return %c0_i32, %arg1 : i32, i32
  }
  func.func @transform_3(%arg0: i32, %arg1: i32) -> (i32, i32) {
    %c0_i32 = arith.constant 0 : i32
    return %arg0, %arg1 : i32, i32
  }
}

</mosaic_0001>

<bundles_post_ra>
// kernel: tpu_custom_call.1
= control target key start
LH: loop header
LB: loop body
LE: loop exit
PB: predicated region body
PF: predicated region fallthrough
CT: control target
= control target key end

     0   :  { %8 = vsyncpa [#allocation3], 0  ;;  %s350_s0 = inlined_call_operand.hbm [shape: f32[16,32], index: 0, kind: input, shape index: {}]   ;;  %s351_s1 = inlined_call_operand.hbm [shape: f32[32,128], index: 1, kind: input, shape index: {}]   ;;  %s352_s2 = inlined_call_operand.vmem [shape: f32[1,128], index: 2, kind: input, shape index: {}]   ;;  %s353_s3 = inlined_call_operand.hbm [shape: f32[16,128], index: 3, kind: output, shape index: {}]  }
   0x1   :  { %9 = vsyncpa [#allocation6], 0 }
   0x2   :  { %10 = vsyncpa [#allocation4], 0  ;;  %s277_s12 = smov [#allocation2]   ;;  %s205_s16 = scalar_lea.hbm %s350_s0, 256 }
   0x3   :  { %s16_s13 = sshll.u32 %s277_s12, 4  ;;  %p206_p0 = scmp.ne.s32.totalorder %s350_s0, %s205_s16  ;;  %s17_s13 = int_to_ptr.vmem [resolvable:$true] %s16_s13 }
   0x4   :  { %p209_p1 = scmp.lt.u32.totalorder %s205_s16, %s350_s0 }
   0x6   :  { %p211_p2 = pnand %p209_p1, %p206_p0 }
   0x8   :  { %214 = shalt.err (!%p211_p2)
}
   0x9   :  { %s215_s21 = scalar_lea.vmem %s17_s13, 256  ;;  %p220_p4 = scmp.lt.s32.totalorder %s17_s13, %s17_s13 }
   0xa   :  { %p216_p3 = scmp.ne.s32.totalorder %s17_s13, %s215_s21  ;;  %p221_p5 = scmp.lt.s32.totalorder %s215_s21, %s215_s21 }
   0xc   :  { %p222_p6 = por %p221_p5, %p220_p4 }
   0xe   :  { %p223_p7 = pnand %p222_p6, %p216_p3 }
  0x10   :  { %226 = shalt.err (!%p223_p7)
}
  0x11   :  { %s278_s22 = smov 128   ;;  %s279_s23 = smov 8  }
  0x12   :  { %22 = dma.hbm_to_vmem [thread:$0]  %s350_s0, 256, %s17_s13, [#allocation3], %s278_s22, %s278_s22, %s279_s23  }
  0x13   :  { %s280_s26 = smov [#allocation5]   ;;  %s227_s30 = scalar_lea.hbm %s351_s1, 512 }
  0x14   :  { %s28_s27 = sshll.u32 %s280_s26, 4  ;;  %p228_p8 = scmp.ne.s32.totalorder %s351_s1, %s227_s30  ;;  %s29_s27 = int_to_ptr.vmem [resolvable:$true] %s28_s27 }
  0x15   :  { %p231_p9 = scmp.lt.u32.totalorder %s227_s30, %s351_s1 }
  0x17   :  { %p233_p10 = pnand %p231_p9, %p228_p8 }
  0x19   :  { %236 = shalt.err (!%p233_p10)
}
  0x1a   :  { %s237_s8 = scalar_lea.vmem %s29_s27, 512  ;;  %p242_p12 = scmp.lt.s32.totalorder %s29_s27, %s29_s27 }
  0x1b   :  { %p238_p11 = scmp.ne.s32.totalorder %s29_s27, %s237_s8  ;;  %p243_p13 = scmp.lt.s32.totalorder %s237_s8, %s237_s8 }
  0x1d   :  { %p244_p0 = por %p243_p13, %p242_p12 }
  0x1f   :  { %p245_p1 = pnand %p244_p0, %p238_p11 }
  0x21   :  { %248 = shalt.err (!%p245_p1)
}
  0x22   :  { %34 = dma.hbm_to_vmem [thread:$0]  %s351_s1, 512, %s29_s27, [#allocation6], %s278_s22, %s278_s22, %s279_s23  }
  0x23   :  { %271 = dma.done.wait [#allocation3], 256  }
  0x24   :  { %272 = vsyncadd [#allocation3], 4294967040 }
  0x25   :  { %273 = dma.done.wait [#allocation6], 512  }
  0x26   :  { %274 = vsyncadd [#allocation6], 4294966784  ;;  %vm56_vm0 = vcmask 261120   ;;  %v45_v0 = vld [vmem:[#allocation5] sm:$0xff]  ;;  %v46_v1 = vld [vmem:[#allocation5 + $0x8] sm:$0xff]  ;;  %s281_s11 = smov [#allocation7]  }
  0x27   :  { %v47_v2 = vld [vmem:[#allocation5 + $0x10] sm:$0xff]  ;;  %v188_v3 = vpack.c.bf16 %v46_v1, %v45_v0  ;;  %v48_v4 = vld [vmem:[#allocation5 + $0x18] sm:$0xff]  ;;  %s155_s12 = sshll.u32 %s281_s11, 4  ;;  %s156_s12 = int_to_ptr.vmem [resolvable:$true] %s155_s12 }
  0x28   :  { %v43_v5 = vld [vmem:[#allocation2] sm:$0xff]  ;;  %v192_v6 = vpack.c.bf16 %v48_v4, %v47_v2  ;;  %v44_v7 = vld [vmem:[#allocation2 + $0x8] sm:$0xff]  ;;  %p254_p3 = scmp.lt.s32.totalorder %s156_s12, %s156_s12 }
  0x29   :  { %185 = vmatprep.mubr.msk.f32.mxu0 %vm56_vm0, %v43_v5  ;;  %189 = vmatprep.subr.bf16.mxu0 %v188_v3  ;;  %v168_v8 = vld [vmem:[%s352_s2] ss:$0 sm:$0xff]  ;;  %s249_s2 = scalar_lea.vmem %s156_s12, 256 }
  0x2a   :  { %191 = vmatpush3.bf16.msra.mxu0 %v188_v3  ;;  %p250_p2 = scmp.ne.s32.totalorder %s156_s12, %s249_s2  ;;  %p255_p4 = scmp.lt.s32.totalorder %s249_s2, %s249_s2 }
  0x2b   :  { %193 = vmatprep.subr.bf16.mxu0 %v192_v6 }
  0x2c   :  { %p256_p5 = por %p255_p4, %p254_p3 }
  0x2e   :  { %195 = vmatpush3.bf16.msra.mxu0 %v192_v6  ;;  %p257_p6 = pnand %p256_p5, %p250_p2 }
  0x31   :  { %186 = vmatmul.mubr.msk.f32.vlgmr.msra.gmra.mrb[0].mxu0 %vm56_vm0, %v44_v7 }
 0x104   :  { %v187_v9 = vpop.f32.mrb[0].mxu0 }
 0x105   :  { %v135_v10 = vadd.f32 %v187_v9, %v168_v8  ;;  %v129_v11 = vpop.f32.mrb[1].mxu0 }
 0x106   :  { %v130_v12 = vadd.f32 %v168_v8, %v129_v11 }
 0x107   :  { %v141_v13 = vmul.f32 0.70710677, %v135_v10  ;;  %v139_v17 = vmul.f32 0.5, %v135_v10 }
 0x108   :  { %v140_v14 = vmul.f32 0.70710677, %v130_v12  ;;  %v138_v19 = vmul.f32 0.5, %v130_v12 }
 0x109   :  { %201 = verf.f32 %v141_v13 }
 0x10a   :  { %203 = verf.f32 %v140_v14 }
 0x113   :  { %v202_v15 = vpop.eup %201 }
 0x114   :  { %v204_v16 = vpop.eup %203  ;;  %v145_v18 = vadd.f32 1.0, %v202_v15 }
 0x115   :  { %v144_v20 = vadd.f32 1.0, %v204_v16 }
 0x116   :  { %v147_v21 = vmul.f32 %v145_v18, %v139_v17 }
 0x117   :  { %v146_v22 = vmul.f32 %v144_v20, %v138_v19 }
 0x118   :  { %149 = vst [vmem:[#allocation7 + $0x8] sm:$0xff] %v147_v21 }
 0x119   :  { %148 = vst [vmem:[#allocation7] sm:$0xff] %v146_v22 }
 0x11a   :  { %260 = shalt.err (!%p257_p6)
}
 0x11b   :  { %s261_s15 = scalar_lea.hbm %s353_s3, 256 }
 0x11c   :  { %p262_p7 = scmp.ne.s32.totalorder %s353_s3, %s261_s15  ;;  %p265_p8 = scmp.lt.u32.totalorder %s261_s15, %s353_s3 }
 0x11e   :  { %p267_p9 = pnand %p265_p8, %p262_p7 }
 0x120   :  { %270 = shalt.err (!%p267_p9)
}
 0x121   :  { %161 = dma.vmem_to_hbm [thread:$0]  %s156_s12, 256, %s353_s3, [#allocation4], %s278_s22, %s278_s22, %s279_s23  }
 0x122   :  { %275 = dma.done.wait [#allocation4], 256  }
 0x123   :  { %276 = vsyncadd [#allocation4], 4294967040 }
 0x124   :  { %165 = vsyncpa [#allocation3], 1 }
 0x125   :  { %166 = vsyncpa [#allocation6], 1 }
 0x126   :  { %167 = vsyncpa [#allocation4], 1 }

</bundles_post_ra>
